<compile_context>
chip_gen: v7x
topology: tpu7x:2x2x1
jax: 0.10.0
libtpu: 0.0.40
codegen_flags: <defaults>
</compile_context>

<pallas_src>
import jax
import jax.numpy as jnp
from jax.experimental import pallas as pl
from jax.experimental.pallas import tpu as pltpu


def _bilinear_matrix(out_size: int, in_size: int) -> jnp.ndarray:
    """1-D bilinear resampling matrix M (out_size, in_size), y = M @ x, with
    PyTorch F.interpolate(align_corners=False) semantics."""
    i = jnp.arange(out_size, dtype=jnp.float32)
    scale = in_size / out_size
    src = (i + 0.5) * scale - 0.5
    src = jnp.clip(src, 0.0, float(in_size - 1))
    i0 = jnp.floor(src).astype(jnp.int32)
    i1 = jnp.minimum(i0 + 1, in_size - 1)
    w1 = src - i0.astype(jnp.float32)
    w0 = 1.0 - w1
    rows = jnp.arange(out_size)
    m = jnp.zeros((out_size, in_size), dtype=jnp.float32)
    m = m.at[rows, i0].add(w0)
    m = m.at[rows, i1].add(w1)
    return m


def _seg_decoder_kernel(x_ref, wb_ref, b_ref, k2_ref, o_ref):
    # x_ref : (B*C_in, fH*fW)       f32   input, pure reshape of NCHW
    # wb_ref: (B*K,    B*C_in)      f32   block-diagonal 1x1-conv weight
    # b_ref : (B*K, 1)              f32   conv bias (tiled over batch)
    # k2_ref: (fH*fW, imgH*imgW)    bf16  fused separable bilinear operator
    # o_ref : (B*K, imgH*imgW)      f32   output, pure reshape of NCHW
    #
    # Dropout2d(0.1) is identity in eval mode.
    # TODO(synk): training-mode channel dropout (pltpu.prng_*) not implemented.
    y = jnp.dot(wb_ref[...], x_ref[...], preferred_element_type=jnp.float32)
    y = y + b_ref[...]                                             # (B*K, fH*fW)
    o_ref[...] = jnp.dot(y.astype(k2_ref.dtype), k2_ref[...],
                         preferred_element_type=jnp.float32).astype(o_ref.dtype)


def seg_decoder_forward(x, weight, bias, img_h: int, img_w: int,
                        interp_dtype=jnp.bfloat16):
    """x: (B, C_in, fH, fW) float32 (NCHW); weight: (K, C_in[,1,1]); bias: (K,).
    Returns (B, K, img_h, img_w) matching PyTorch SegDecoder.forward (eval mode)."""
    b_sz, c_in, f_h, f_w = x.shape
    num_class = weight.shape[0]
    hw_in = f_h * f_w
    hw_out = img_h * img_w

    # --- wrapper-side layout plumbing (reshapes only; no transposes) ---------
    x2 = x.reshape(b_sz * c_in, hw_in).astype(jnp.float32)
    w2 = weight.reshape(num_class, c_in).astype(jnp.float32)
    wb = jnp.kron(jnp.eye(b_sz, dtype=jnp.float32), w2)           # (B*K, B*C_in)
    bcol = jnp.tile(bias.astype(jnp.float32).reshape(-1),
                    b_sz).reshape(b_sz * num_class, 1)            # (B*K, 1)
    uh = _bilinear_matrix(img_h, f_h)                             # (imgH, fH)
    uw = _bilinear_matrix(img_w, f_w)                             # (imgW, fW)
    # K2[f*fW+g, H*imgW+W] = uh[H,f] * uw[W,g]
    k2 = jnp.einsum('Hf,Wg->fgHW', uh, uw).reshape(hw_in, hw_out).astype(interp_dtype)

    flops = 2 * (b_sz * num_class) * (b_sz * c_in) * hw_in \
            + 2 * (b_sz * num_class) * hw_in * hw_out
    bytes_accessed = (x2.size * 4 + wb.size * 4 + bcol.size * 4
                      + k2.size * k2.dtype.itemsize
                      + b_sz * num_class * hw_out * 4)

    vmem = pl.BlockSpec(memory_space=pltpu.MemorySpace.VMEM)
    out_flat = pl.pallas_call(
        _seg_decoder_kernel,
        out_shape=jax.ShapeDtypeStruct((b_sz * num_class, hw_out), jnp.float32),
        in_specs=[vmem, vmem, vmem, vmem],
        out_specs=vmem,
        cost_estimate=pl.CostEstimate(flops=flops, transcendentals=0,
                                      bytes_accessed=bytes_accessed),
    )(x2, wb, bcol, k2)

    return out_flat.reshape(b_sz, num_class, img_h, img_w).astype(x.dtype)


def _reference(x, weight, bias, img_h, img_w):
    """Pure-JAX reference: 1x1 conv + jax.image.resize bilinear (half-pixel
    centers == PyTorch align_corners=False for upsampling)."""
    w2 = weight.reshape(weight.shape[0], -1)
    y = jnp.einsum('kc,bchw->bkhw', w2, x) + bias[None, :, None, None]
    return jax.image.resize(y, (x.shape[0], w2.shape[0], img_h, img_w),
                            method='bilinear')


if __name__ == "__main__":
    # Small shapes consistent with SegDecoder: prior_feat_channels=4, num_layers=2
    # -> C_in = 8 ; num_class = 5 ; feature map 16x16 ; upsample to 32x32.
    B, PRIOR_C, NUM_LAYERS, NUM_CLASS = 2, 4, 2, 5
    C_IN = PRIOR_C * NUM_LAYERS
    FH = FW = 16
    IMG_H = IMG_W = 32

    key = jax.random.PRNGKey(0)
    kx, kw, kb = jax.random.split(key, 3)
    x = jax.random.normal(kx, (B, C_IN, FH, FW), dtype=jnp.float32)
    # Parameter shapes mirror nn.Conv2d(C_IN, NUM_CLASS, 1).
    weight = 0.1 * jax.random.normal(kw, (NUM_CLASS, C_IN, 1, 1), dtype=jnp.float32)
    bias = 0.1 * jax.random.normal(kb, (NUM_CLASS,), dtype=jnp.float32)

    out = seg_decoder_forward(x, weight, bias, IMG_H, IMG_W)
    out = jax.block_until_ready(out)

    ref = _reference(x, weight, bias, IMG_H, IMG_W)
    assert out.shape == (B, NUM_CLASS, IMG_H, IMG_W), out.shape
    # bf16 inputs on the upsample matmul (fp32 accumulate) -> ~1e-3 abs error.
    assert jnp.allclose(out, ref, atol=1e-2, rtol=1e-2), float(jnp.abs(out - ref).max())

    print("KERNEL_OK")
</pallas_src>

<mosaic_0001>
module attributes {stable_mosaic.version = 11 : i64} {
  func.func @_seg_decoder_kernel(%arg0: memref<16x256xf32, #tpu.memory_space<vmem>>, %arg1: memref<10x16xf32, #tpu.memory_space<vmem>>, %arg2: memref<10x1xf32, #tpu.memory_space<vmem>>, %arg3: memref<256x1024xbf16, #tpu.memory_space<vmem>>, %arg4: memref<10x1024xf32, #tpu.memory_space<vmem>>) attributes {dimension_semantics = [], scalar_prefetch = 0 : i64, scratch_operands = 0 : i64, tpu.core_type = #tpu.core_type<tc>} {
    %c0 = arith.constant 0 : index
    %c0_0 = arith.constant 0 : index
    %0 = vector.load %arg1[%c0, %c0_0] : memref<10x16xf32, #tpu.memory_space<vmem>>, vector<10x16xf32>
    %c0_1 = arith.constant 0 : index
    %c0_2 = arith.constant 0 : index
    %1 = vector.load %arg0[%c0_1, %c0_2] : memref<16x256xf32, #tpu.memory_space<vmem>>, vector<16x256xf32>
    %cst = arith.constant dense<0.000000e+00> : vector<10x256xf32>
    %2 = tpu.matmul %0, %1, %cst {dimension_numbers = #tpu.dot_dimension_numbers<[1], [0], [0], [1], [0, 0, 1, 1], [], []>} : vector<10x16xf32>, vector<16x256xf32>, vector<10x256xf32> -> vector<10x256xf32>
    %c0_3 = arith.constant 0 : index
    %c0_4 = arith.constant 0 : index
    %3 = vector.load %arg2[%c0_3, %c0_4] : memref<10x1xf32, #tpu.memory_space<vmem>>, vector<10x1xf32>
    %4 = vector.broadcast %3 : vector<10x1xf32> to vector<10x256xf32>
    %5 = arith.addf %2, %4 : vector<10x256xf32>
    %6 = arith.truncf %5 : vector<10x256xf32> to vector<10x256xbf16>
    %c0_5 = arith.constant 0 : index
    %c0_6 = arith.constant 0 : index
    %7 = vector.load %arg3[%c0_5, %c0_6] : memref<256x1024xbf16, #tpu.memory_space<vmem>>, vector<256x1024xbf16>
    %cst_7 = arith.constant dense<0.000000e+00> : vector<10x1024xf32>
    %8 = tpu.matmul %6, %7, %cst_7 {dimension_numbers = #tpu.dot_dimension_numbers<[1], [0], [0], [1], [0, 0, 1, 1], [], []>} : vector<10x256xbf16>, vector<256x1024xbf16>, vector<10x1024xf32> -> vector<10x1024xf32>
    %c0_8 = arith.constant 0 : index
    %c0_9 = arith.constant 0 : index
    %9 = vector.load %arg4[%c0_8, %c0_9] : memref<10x1024xf32, #tpu.memory_space<vmem>>, vector<10x1024xf32>
    tpu.vector_store %arg4[%c0_8, %c0_9], %8 {strides = array<i32>} : memref<10x1024xf32, #tpu.memory_space<vmem>>, vector<10x1024xf32>,
    return
  }
}

</mosaic_0001>

<bundles_post_ra>
// kernel: tpu_custom_call.1
= control target key start
LH: loop header
LB: loop body
LE: loop exit
PB: predicated region body
PF: predicated region fallthrough
CT: control target
= control target key end

     0   :  { %9 = vsyncpa [#allocation3], 0  ;;  %s1434_s0 = inlined_call_operand.hbm [shape: f32[16,256], index: 0, kind: input, shape index: {}]   ;;  %s1435_s1 = inlined_call_operand.vmem [shape: f32[10,16], index: 1, kind: input, shape index: {}]   ;;  %s1436_s2 = inlined_call_operand.vmem [shape: f32[10,1], index: 2, kind: input, shape index: {}]   ;;  %s1437_s3 = inlined_call_operand.hbm [shape: bf16[256,1024], index: 3, kind: input, shape index: {}]   ;;  %s1438_s4 = inlined_call_operand.hbm [shape: f32[10,1024], index: 4, kind: output, shape index: {}]  }
   0x1   :  { %10 = vsyncpa [#allocation6], 0 }
   0x2   :  { %11 = vsyncpa [#allocation4], 0  ;;  %s1342_s15 = smov [#allocation2]   ;;  %s1270_s19 = scalar_lea.hbm %s1434_s0, 512 }
   0x3   :  { %s17_s16 = sshll.u32 %s1342_s15, 4  ;;  %p1271_p0 = scmp.ne.s32.totalorder %s1434_s0, %s1270_s19  ;;  %s18_s16 = int_to_ptr.vmem [resolvable:$true] %s17_s16 }
   0x4   :  { %p1274_p1 = scmp.lt.u32.totalorder %s1270_s19, %s1434_s0 }
   0x6   :  { %p1276_p2 = pnand %p1274_p1, %p1271_p0 }
   0x8   :  { %1279 = shalt.err (!%p1276_p2)
}
   0x9   :  { %s1280_s24 = scalar_lea.vmem %s18_s16, 512  ;;  %p1285_p4 = scmp.lt.s32.totalorder %s18_s16, %s18_s16 }
   0xa   :  { %p1281_p3 = scmp.ne.s32.totalorder %s18_s16, %s1280_s24  ;;  %p1286_p5 = scmp.lt.s32.totalorder %s1280_s24, %s1280_s24 }
   0xc   :  { %p1287_p6 = por %p1286_p5, %p1285_p4 }
   0xe   :  { %p1288_p7 = pnand %p1287_p6, %p1281_p3 }
  0x10   :  { %1291 = shalt.err (!%p1288_p7)
}
  0x11   :  { %s1343_s25 = smov 256   ;;  %s1344_s26 = smov 16  }
  0x12   :  { %23 = dma.hbm_to_vmem [thread:$0]  %s1434_s0, 512, %s18_s16, [#allocation3], %s1343_s25, %s1343_s25, %s1344_s26  }
  0x13   :  { %s1345_s29 = smov [#allocation5]   ;;  %s1292_s7 = scalar_lea.hbm %s1437_s3, 16384 }
  0x14   :  { %s33_s30 = sshll.u32 %s1345_s29, 4  ;;  %p1293_p8 = scmp.ne.s32.totalorder %s1437_s3, %s1292_s7  ;;  %s34_s30 = int_to_ptr.vmem [resolvable:$true] %s33_s30 }
  0x15   :  { %p1296_p9 = scmp.lt.u32.totalorder %s1292_s7, %s1437_s3 }
  0x17   :  { %p1298_p10 = pnand %p1296_p9, %p1293_p8 }
  0x19   :  { %1301 = shalt.err (!%p1298_p10)
}
  0x1a   :  { %s1302_s12 = scalar_lea.vmem %s34_s30, 16384  ;;  %p1307_p12 = scmp.lt.s32.totalorder %s34_s30, %s34_s30 }
  0x1b   :  { %p1303_p11 = scmp.ne.s32.totalorder %s34_s30, %s1302_s12  ;;  %p1308_p13 = scmp.lt.s32.totalorder %s1302_s12, %s1302_s12 }
  0x1d   :  { %p1309_p0 = por %p1308_p13, %p1307_p12 }
  0x1f   :  { %p1310_p1 = pnand %p1309_p0, %p1303_p11 }
  0x21   :  { %1313 = shalt.err (!%p1310_p1)
}
  0x22   :  { %s1346_s0 = smov 512   ;;  %s1347_s13 = smov 32  }
  0x23   :  { %39 = dma.hbm_to_vmem [thread:$0]  %s1437_s3, 16384, %s34_s30, [#allocation6], %s1346_s0, %s1346_s0, %s1347_s13  }
  0x24   :  { %1336 = dma.done.wait [#allocation3], 512  }
  0x25   :  { %1337 = vsyncadd [#allocation3], 4294966784 }
  0x26   :  { %1338 = dma.done.wait [#allocation6], 16384  }
  0x27   :  { %1339 = vsyncadd [#allocation6], 4294950912  ;;  %v1348_v0 = vmov 0.0   ;;  %v1349_v1 = vmov 0   ;;  %v49_v2 = vld [vmem:[#allocation2 + $0x8] sm:$0xff]  ;;  %v51_v3 = vld [vmem:[#allocation2 + $0x18] sm:$0xff] }
  0x28   :  { %135 = vmatprep.mubr.f32.mxu0 %v1348_v0  ;;  %1269 = vset.pattern.permute.xlu0 %v1349_v1  ;;  %v48_v4 = vld [vmem:[#allocation2] sm:$0xff]  ;;  %v1254_v5 = vpack.c.bf16 %v51_v3, %v49_v2  ;;  %v50_v6 = vld [vmem:[#allocation2 + $0x10] sm:$0xff]  ;;  %v53_v10 = vld [vmem:[%s1436_s2 + $0x8] sm:$0x3]  ;;  %vm64_vm0 = vcmask 130048  }
  0x29   :  { %v1256_v7 = vpack.c.bf16 %v50_v6, %v48_v4  ;;  %v46_v8 = vld [vmem:[%s1435_s1] sm:$0xff]  ;;  %v151_v13 = vld [vmem:[#allocation5 + $0x8] sm:$0xff] }
  0x2a   :  { %v52_v9 = vld [vmem:[%s1436_s2] sm:$0xff]  ;;  %1255 = vmatprep.subr.bf16.mxu0 %v1254_v5  ;;  %v155_v14 = vld [vmem:[#allocation5 + $0x28] sm:$0xff] }
  0x2b   :  { %v150_v11 = vld [vmem:[#allocation5] sm:$0xff]  ;;  %56 = vperm.xlu0 %1269, %v52_v9   ;;  %1257 = vmatpush1.bf16.msra.mxu0 %v1256_v7  ;;  %v1129_v16 = vcombine.high %v151_v13, %v155_v14  ;;  %v159_v20 = vld [vmem:[#allocation5 + $0x48] sm:$0xff]  ;;  %v1128_v21 = vcombine.low %v151_v13, %v155_v14 }
  0x2c   :  { %v154_v12 = vld [vmem:[#allocation5 + $0x20] sm:$0xff]  ;;  %v163_v23 = vld [vmem:[#allocation5 + $0x68] sm:$0xff] }
  0x2d   :  { %v1127_v15 = vcombine.high %v150_v11, %v154_v12  ;;  %v1126_v17 = vcombine.low %v150_v11, %v154_v12  ;;  %v158_v18 = vld [vmem:[#allocation5 + $0x40] sm:$0xff]  ;;  %961 = vmatprep.subr.bf16.mxu0 %v1129_v16  ;;  %v1137_v24 = vcombine.high %v159_v20, %v163_v23  ;;  %v167_v27 = vld [vmem:[#allocation5 + $0x88] sm:$0xff]  ;;  %v1136_v31 = vcombine.low %v159_v20, %v163_v23 }
  0x2e   :  { %v162_v19 = vld [vmem:[#allocation5 + $0x60] sm:$0xff]  ;;  %1124 = vmatmul.mubr.msk.f32.vlgmr.msra.gmra.mrb[0].mxu0 %vm64_vm0, %v46_v8  ;;  %v171_v28 = vld [vmem:[#allocation5 + $0xa8] sm:$0xff] }
  0x2f   :  { %v1135_v22 = vcombine.high %v158_v18, %v162_v19  ;;  %918 = vmatprep.subr.bf16.mxu1 %v1127_v15  ;;  %v166_v25 = vld [vmem:[#allocation5 + $0x80] sm:$0xff]  ;;  %61 = vperm.xlu0 %1269, %v53_v10   ;;  %v47_v29 = vld [vmem:[%s1435_s1 + $0x8] sm:$0x3]  ;;  %v1134_v30 = vcombine.low %v158_v18, %v162_v19  ;;  %v1145_v33 = vcombine.high %v167_v27, %v171_v28  ;;  %s1350_s1 = smov [#allocation7]  }
  0x30   :  { %v170_v26 = vld [vmem:[#allocation5 + $0xa0] sm:$0xff]  ;;  %141 = vmatprep.mubr.f32.mxu0 %v1348_v0  ;;  %919 = vmatpush1.bf16.msra.mxu1 %v1126_v17  ;;  %v175_v36 = vld [vmem:[#allocation5 + $0xc8] sm:$0xff]  ;;  %v1144_v39 = vcombine.low %v167_v27, %v171_v28  ;;  %s1111_s22 = sshll.u32 %s1350_s1, 4  ;;  %s1112_s22 = int_to_ptr.vmem [resolvable:$true] %s1111_s22 }
  0x31   :  { %962 = vmatpush1.bf16.msra.mxu0 %v1128_v21  ;;  %920 = vmatprep.subr.bf16.mxu1 %v1135_v22  ;;  %v1143_v32 = vcombine.high %v166_v25, %v170_v26  ;;  %v174_v34 = vld [vmem:[#allocation5 + $0xc0] sm:$0xff]  ;;  %v179_v37 = vld [vmem:[#allocation5 + $0xe8] sm:$0xff]  ;;  %v1142_v38 = vcombine.low %v166_v25, %v170_v26  ;;  %s1314_s23 = scalar_lea.vmem %s1112_s22, 2048  ;;  %p1319_p3 = scmp.lt.s32.totalorder %s1112_s22, %s1112_s22 }
  0x32   :  { %963 = vmatprep.subr.bf16.mxu0 %v1137_v24  ;;  %v178_v35 = vld [vmem:[#allocation5 + $0xe0] sm:$0xff]  ;;  %1125 = vmatmul.mubr.msk.f32.gmra.mrb[2].mxu0 %vm64_vm0, %v47_v29  ;;  %v1153_v41 = vcombine.high %v175_v36, %v179_v37  ;;  %v183_v44 = vld [vmem:[#allocation5 + $0x108] sm:$0xff]  ;;  %v1152_v47 = vcombine.low %v175_v36, %v179_v37  ;;  %p1315_p2 = scmp.ne.s32.totalorder %s1112_s22, %s1314_s23  ;;  %p1320_p4 = scmp.lt.s32.totalorder %s1314_s23, %s1314_s23 }
  0x33   :  { %v1151_v40 = vcombine.high %v174_v34, %v178_v35  ;;  %v182_v42 = vld [vmem:[#allocation5 + $0x100] sm:$0xff]  ;;  %v187_v45 = vld [vmem:[#allocation5 + $0x128] sm:$0xff]  ;;  %v1150_v46 = vcombine.low %v174_v34, %v178_v35 }
  0x34   :  { %921 = vmatpush1.bf16.msra.mxu1 %v1134_v30  ;;  %v186_v43 = vld [vmem:[#allocation5 + $0x120] sm:$0xff]  ;;  %v1161_v49 = vcombine.high %v183_v44, %v187_v45  ;;  %v191_v52 = vld [vmem:[#allocation5 + $0x148] sm:$0xff]  ;;  %v1160_v55 = vcombine.low %v183_v44, %v187_v45  ;;  %p1321_p5 = por %p1320_p4, %p1319_p3 }
  0x35   :  { %964 = vmatpush1.bf16.msra.mxu0 %v1136_v31  ;;  %922 = vmatprep.subr.bf16.mxu1 %v1143_v32  ;;  %v1159_v48 = vcombine.high %v182_v42, %v186_v43  ;;  %v190_v50 = vld [vmem:[#allocation5 + $0x140] sm:$0xff]  ;;  %v195_v53 = vld [vmem:[#allocation5 + $0x168] sm:$0xff]  ;;  %v1158_v54 = vcombine.low %v182_v42, %v186_v43 }
  0x36   :  { %965 = vmatprep.subr.bf16.mxu0 %v1145_v33  ;;  %v194_v51 = vld [vmem:[#allocation5 + $0x160] sm:$0xff]  ;;  %v1169_v57 = vcombine.high %v191_v52, %v195_v53  ;;  %v199_v60 = vld [vmem:[#allocation5 + $0x188] sm:$0xff]  ;;  %v1168_v63 = vcombine.low %v191_v52, %v195_v53  ;;  %p1322_p6 = pnand %p1321_p5, %p1315_p2 }
  0x37   :  { %v1167_v56 = vcombine.high %v190_v50, %v194_v51  ;;  %v198_v58 = vld [vmem:[#allocation5 + $0x180] sm:$0xff]  ;;  %v203_v61 = vld [vmem:[#allocation5 + $0x1a8] sm:$0xff]  ;;  %v1166_v62 = vcombine.low %v190_v50, %v194_v51 }
  0x38   :  { %923 = vmatpush1.bf16.msra.mxu1 %v1142_v38  ;;  %v202_v59 = vld [vmem:[#allocation5 + $0x1a0] sm:$0xff]  ;;  %v1177_v1 = vcombine.high %v199_v60, %v203_v61  ;;  %v207_v4 = vld [vmem:[#allocation5 + $0x1c8] sm:$0xff]  ;;  %v1176_v7 = vcombine.low %v199_v60, %v203_v61 }
  0x39   :  { %966 = vmatpush1.bf16.msra.mxu0 %v1144_v39  ;;  %924 = vmatprep.subr.bf16.mxu1 %v1151_v40  ;;  %v1175_v0 = vcombine.high %v198_v58, %v202_v59  ;;  %v206_v2 = vld [vmem:[#allocation5 + $0x1c0] sm:$0xff]  ;;  %v211_v5 = vld [vmem:[#allocation5 + $0x1e8] sm:$0xff]  ;;  %v1174_v6 = vcombine.low %v198_v58, %v202_v59 }
  0x3a   :  { %967 = vmatprep.subr.bf16.mxu0 %v1153_v41  ;;  %v210_v3 = vld [vmem:[#allocation5 + $0x1e0] sm:$0xff]  ;;  %v1185_v9 = vcombine.high %v207_v4, %v211_v5  ;;  %v215_v12 = vld [vmem:[#allocation5 + $0x208] sm:$0xff]  ;;  %v1184_v15 = vcombine.low %v207_v4, %v211_v5 }
  0x3b   :  { %v1183_v8 = vcombine.high %v206_v2, %v210_v3  ;;  %v214_v10 = vld [vmem:[#allocation5 + $0x200] sm:$0xff]  ;;  %v219_v13 = vld [vmem:[#allocation5 + $0x228] sm:$0xff]  ;;  %v1182_v14 = vcombine.low %v206_v2, %v210_v3 }
  0x3c   :  { %925 = vmatpush1.bf16.msra.mxu1 %v1150_v46  ;;  %v218_v11 = vld [vmem:[#allocation5 + $0x220] sm:$0xff]  ;;  %v1193_v17 = vcombine.high %v215_v12, %v219_v13  ;;  %v223_v20 = vld [vmem:[#allocation5 + $0x248] sm:$0xff]  ;;  %v1192_v23 = vcombine.low %v215_v12, %v219_v13  ;;  %v152_v12 = vld [vmem:[#allocation5 + $0x10] sm:$0xff] }
  0x3d   :  { %968 = vmatpush1.bf16.msra.mxu0 %v1152_v47  ;;  %926 = vmatprep.subr.bf16.mxu1 %v1159_v48  ;;  %v1191_v16 = vcombine.high %v214_v10, %v218_v11  ;;  %v222_v18 = vld [vmem:[#allocation5 + $0x240] sm:$0xff]  ;;  %v227_v21 = vld [vmem:[#allocation5 + $0x268] sm:$0xff]  ;;  %v1190_v22 = vcombine.low %v214_v10, %v218_v11  ;;  %v156_v13 = vld [vmem:[#allocation5 + $0x30] sm:$0xff] }
  0x3e   :  { %969 = vmatprep.subr.bf16.mxu0 %v1161_v49  ;;  %v226_v19 = vld [vmem:[#allocation5 + $0x260] sm:$0xff]  ;;  %v1201_v25 = vcombine.high %v223_v20, %v227_v21  ;;  %v231_v28 = vld [vmem:[#allocation5 + $0x288] sm:$0xff]  ;;  %v1200_v31 = vcombine.low %v223_v20, %v227_v21 }
  0x3f   :  { %v1199_v24 = vcombine.high %v222_v18, %v226_v19  ;;  %v230_v26 = vld [vmem:[#allocation5 + $0x280] sm:$0xff]  ;;  %v235_v29 = vld [vmem:[#allocation5 + $0x2a8] sm:$0xff]  ;;  %v1198_v30 = vcombine.low %v222_v18, %v226_v19 }
  0x40   :  { %927 = vmatpush1.bf16.msra.mxu1 %v1158_v54  ;;  %v234_v27 = vld [vmem:[#allocation5 + $0x2a0] sm:$0xff]  ;;  %v1209_v33 = vcombine.high %v231_v28, %v235_v29  ;;  %v239_v36 = vld [vmem:[#allocation5 + $0x2c8] sm:$0xff]  ;;  %v1208_v39 = vcombine.low %v231_v28, %v235_v29 }
  0x41   :  { %970 = vmatpush1.bf16.msra.mxu0 %v1160_v55  ;;  %928 = vmatprep.subr.bf16.mxu1 %v1167_v56  ;;  %v1207_v32 = vcombine.high %v230_v26, %v234_v27  ;;  %v238_v34 = vld [vmem:[#allocation5 + $0x2c0] sm:$0xff]  ;;  %v243_v37 = vld [vmem:[#allocation5 + $0x2e8] sm:$0xff]  ;;  %v1206_v38 = vcombine.low %v230_v26, %v234_v27 }
  0x42   :  { %971 = vmatprep.subr.bf16.mxu0 %v1169_v57  ;;  %v242_v35 = vld [vmem:[#allocation5 + $0x2e0] sm:$0xff]  ;;  %v1217_v41 = vcombine.high %v239_v36, %v243_v37  ;;  %v247_v44 = vld [vmem:[#allocation5 + $0x308] sm:$0xff]  ;;  %v1216_v47 = vcombine.low %v239_v36, %v243_v37  ;;  %v168_v36 = vld [vmem:[#allocation5 + $0x90] sm:$0xff] }
  0x43   :  { %v1215_v40 = vcombine.high %v238_v34, %v242_v35  ;;  %v246_v42 = vld [vmem:[#allocation5 + $0x300] sm:$0xff]  ;;  %v251_v45 = vld [vmem:[#allocation5 + $0x328] sm:$0xff]  ;;  %v1214_v46 = vcombine.low %v238_v34, %v242_v35  ;;  %v165_v34 = vld [vmem:[#allocation5 + $0x78] sm:$0xff] }
  0x44   :  { %929 = vmatpush1.bf16.msra.mxu1 %v1166_v62  ;;  %v250_v43 = vld [vmem:[#allocation5 + $0x320] sm:$0xff]  ;;  %v1225_v49 = vcombine.high %v247_v44, %v251_v45  ;;  %v255_v52 = vld [vmem:[#allocation5 + $0x348] sm:$0xff]  ;;  %v1224_v55 = vcombine.low %v247_v44, %v251_v45 }
  0x45   :  { %972 = vmatpush1.bf16.msra.mxu0 %v1168_v63  ;;  %930 = vmatprep.subr.bf16.mxu1 %v1175_v0  ;;  %v1223_v48 = vcombine.high %v246_v42, %v250_v43  ;;  %v254_v50 = vld [vmem:[#allocation5 + $0x340] sm:$0xff]  ;;  %v259_v53 = vld [vmem:[#allocation5 + $0x368] sm:$0xff]  ;;  %v1222_v54 = vcombine.low %v246_v42, %v250_v43 }
  0x46   :  { %973 = vmatprep.subr.bf16.mxu0 %v1177_v1  ;;  %v258_v51 = vld [vmem:[#allocation5 + $0x360] sm:$0xff]  ;;  %v1233_v57 = vcombine.high %v255_v52, %v259_v53  ;;  %v1232_v59 = vcombine.low %v255_v52, %v259_v53  ;;  %v263_v62 = vld [vmem:[#allocation5 + $0x388] sm:$0xff] }
  0x47   :  { %v1231_v56 = vcombine.high %v254_v50, %v258_v51  ;;  %v1230_v58 = vcombine.low %v254_v50, %v258_v51  ;;  %v262_v60 = vld [vmem:[#allocation5 + $0x380] sm:$0xff]  ;;  %v267_v0 = vld [vmem:[#allocation5 + $0x3a8] sm:$0xff] }
  0x48   :  { %931 = vmatpush1.bf16.msra.mxu1 %v1174_v6  ;;  %v266_v61 = vld [vmem:[#allocation5 + $0x3a0] sm:$0xff]  ;;  %v1240_v1 = vcombine.low %v263_v62, %v267_v0  ;;  %v1241_v2 = vcombine.high %v263_v62, %v267_v0  ;;  %v271_v6 = vld [vmem:[#allocation5 + $0x3c8] sm:$0xff]  ;;  %v192_v62 = vld [vmem:[#allocation5 + $0x150] sm:$0xff] }
  0x49   :  { %974 = vmatpush1.bf16.msra.mxu0 %v1176_v7  ;;  %932 = vmatprep.subr.bf16.mxu1 %v1183_v8  ;;  %v1239_v63 = vcombine.high %v262_v60, %v266_v61  ;;  %v1238_v3 = vcombine.low %v262_v60, %v266_v61  ;;  %v270_v4 = vld [vmem:[#allocation5 + $0x3c0] sm:$0xff]  ;;  %v275_v8 = vld [vmem:[#allocation5 + $0x3e8] sm:$0xff]  ;;  %v193_v0 = vld [vmem:[#allocation5 + $0x158] sm:$0xff] }
  0x4a   :  { %975 = vmatprep.subr.bf16.mxu0 %v1185_v9  ;;  %v274_v5 = vld [vmem:[#allocation5 + $0x3e0] sm:$0xff]  ;;  %v1248_v9 = vcombine.low %v271_v6, %v275_v8  ;;  %v1249_v10 = vcombine.high %v271_v6, %v275_v8  ;;  %v200_v6 = vld [vmem:[#allocation5 + $0x190] sm:$0xff]  ;;  %v201_v8 = vld [vmem:[#allocation5 + $0x198] sm:$0xff] }
  0x4b   :  { %v1247_v7 = vcombine.high %v270_v4, %v274_v5  ;;  %v1246_v11 = vcombine.low %v270_v4, %v274_v5 }
  0x4c   :  { %933 = vmatpush1.bf16.msra.mxu1 %v1182_v14  ;;  %v153_v14 = vld [vmem:[#allocation5 + $0x18] sm:$0xff] }
  0x4d   :  { %976 = vmatpush1.bf16.msra.mxu0 %v1184_v15  ;;  %934 = vmatprep.subr.bf16.mxu1 %v1191_v16  ;;  %v1131_v15 = vcombine.high %v152_v12, %v156_v13  ;;  %v157_v16 = vld [vmem:[#allocation5 + $0x38] sm:$0xff] }
  0x4e   :  { %977 = vmatprep.subr.bf16.mxu0 %v1193_v17  ;;  %v1130_v17 = vcombine.low %v152_v12, %v156_v13  ;;  %v1132_v18 = vcombine.low %v153_v14, %v157_v16  ;;  %v1133_v19 = vcombine.high %v153_v14, %v157_v16  ;;  %v208_v14 = vld [vmem:[#allocation5 + $0x1d0] sm:$0xff]  ;;  %v209_v16 = vld [vmem:[#allocation5 + $0x1d8] sm:$0xff] }
  0x50   :  { %935 = vmatpush1.bf16.msra.mxu1 %v1190_v22 }
  0x51   :  { %978 = vmatpush1.bf16.msra.mxu0 %v1192_v23  ;;  %936 = vmatprep.subr.bf16.mxu1 %v1199_v24 }
  0x52   :  { %979 = vmatprep.subr.bf16.mxu0 %v1201_v25 }
  0x54   :  { %937 = vmatpush1.bf16.msra.mxu1 %v1198_v30  ;;  %v160_v30 = vld [vmem:[#allocation5 + $0x50] sm:$0xff] }
  0x55   :  { %980 = vmatpush1.bf16.msra.mxu0 %v1200_v31  ;;  %938 = vmatprep.subr.bf16.mxu1 %v1207_v32  ;;  %v164_v32 = vld [vmem:[#allocation5 + $0x70] sm:$0xff] }
  0x56   :  { %981 = vmatprep.subr.bf16.mxu0 %v1209_v33  ;;  %v161_v33 = vld [vmem:[#allocation5 + $0x58] sm:$0xff]  ;;  %v1139_v37 = vcombine.high %v160_v30, %v164_v32  ;;  %v1138_v42 = vcombine.low %v160_v30, %v164_v32  ;;  %v224_v30 = vld [vmem:[#allocation5 + $0x250] sm:$0xff] }
  0x57   :  { %v1140_v43 = vcombine.low %v161_v33, %v165_v34  ;;  %v228_v32 = vld [vmem:[#allocation5 + $0x270] sm:$0xff] }
  0x58   :  { %939 = vmatpush1.bf16.msra.mxu1 %v1206_v38  ;;  %v1141_v38 = vcombine.high %v161_v33, %v165_v34  ;;  %v225_v33 = vld [vmem:[#allocation5 + $0x258] sm:$0xff] }
  0x59   :  { %982 = vmatpush1.bf16.msra.mxu0 %v1208_v39  ;;  %940 = vmatprep.subr.bf16.mxu1 %v1215_v40  ;;  %v172_v39 = vld [vmem:[#allocation5 + $0xb0] sm:$0xff]  ;;  %v169_v40 = vld [vmem:[#allocation5 + $0x98] sm:$0xff] }
  0x5a   :  { %983 = vmatprep.subr.bf16.mxu0 %v1217_v41  ;;  %v173_v41 = vld [vmem:[#allocation5 + $0xb8] sm:$0xff]  ;;  %v1147_v44 = vcombine.high %v168_v36, %v172_v39  ;;  %v1146_v50 = vcombine.low %v168_v36, %v172_v39  ;;  %v232_v39 = vld [vmem:[#allocation5 + $0x290] sm:$0xff] }
  0x5b   :  { %v1149_v45 = vcombine.high %v169_v40, %v173_v41  ;;  %v1148_v51 = vcombine.low %v169_v40, %v173_v41  ;;  %v229_v34 = vld [vmem:[#allocation5 + $0x278] sm:$0xff]  ;;  %v236_v40 = vld [vmem:[#allocation5 + $0x2b0] sm:$0xff] }
  0x5c   :  { %941 = vmatpush1.bf16.msra.mxu1 %v1214_v46  ;;  %v176_v46 = vld [vmem:[#allocation5 + $0xd0] sm:$0xff]  ;;  %v233_v41 = vld [vmem:[#allocation5 + $0x298] sm:$0xff] }
  0x5d   :  { %984 = vmatpush1.bf16.msra.mxu0 %v1216_v47  ;;  %942 = vmatprep.subr.bf16.mxu1 %v1223_v48  ;;  %v180_v47 = vld [vmem:[#allocation5 + $0xf0] sm:$0xff]  ;;  %v177_v48 = vld [vmem:[#allocation5 + $0xd8] sm:$0xff] }
  0x5e   :  { %985 = vmatprep.subr.bf16.mxu0 %v1225_v49  ;;  %v181_v49 = vld [vmem:[#allocation5 + $0xf8] sm:$0xff]  ;;  %v1155_v52 = vcombine.high %v176_v46, %v180_v47 }
  0x5f   :  { %v1157_v53 = vcombine.high %v177_v48, %v181_v49 }
  0x60   :  { %943 = vmatpush1.bf16.msra.mxu1 %v1222_v54  ;;  %v184_v54 = vld [vmem:[#allocation5 + $0x110] sm:$0xff] }
  0x61   :  { %986 = vmatpush1.bf16.msra.mxu0 %v1224_v55  ;;  %944 = vmatprep.subr.bf16.mxu1 %v1231_v56  ;;  %v188_v55 = vld [vmem:[#allocation5 + $0x130] sm:$0xff]  ;;  %v185_v56 = vld [vmem:[#allocation5 + $0x118] sm:$0xff] }
  0x62   :  { %987 = vmatprep.subr.bf16.mxu0 %v1233_v57  ;;  %v189_v57 = vld [vmem:[#allocation5 + $0x138] sm:$0xff]  ;;  %v1163_v60 = vcombine.high %v184_v54, %v188_v55 }
  0x63   :  { %v1165_v61 = vcombine.high %v185_v56, %v189_v57 }
  0x64   :  { %945 = vmatpush1.bf16.msra.mxu1 %v1230_v58  ;;  %v1154_v58 = vcombine.low %v176_v46, %v180_v47  ;;  %v240_v47 = vld [vmem:[#allocation5 + $0x2d0] sm:$0xff] }
  0x65   :  { %988 = vmatpush1.bf16.msra.mxu0 %v1232_v59  ;;  %946 = vmatprep.subr.bf16.mxu1 %v1239_v63  ;;  %v1156_v59 = vcombine.low %v177_v48, %v181_v49  ;;  %v196_v63 = vld [vmem:[#allocation5 + $0x170] sm:$0xff]  ;;  %v241_v49 = vld [vmem:[#allocation5 + $0x2d8] sm:$0xff] }
  0x66   :  { %989 = vmatprep.subr.bf16.mxu0 %v1241_v2  ;;  %v1162_v2 = vcombine.low %v184_v54, %v188_v55  ;;  %v1171_v4 = vcombine.high %v192_v62, %v196_v63  ;;  %v244_v48 = vld [vmem:[#allocation5 + $0x2f0] sm:$0xff] }
  0x67   :  { %v248_v55 = vld [vmem:[#allocation5 + $0x310] sm:$0xff] }
  0x68   :  { %947 = vmatpush1.bf16.msra.mxu1 %v1238_v3  ;;  %v1164_v3 = vcombine.low %v185_v56, %v189_v57  ;;  %v252_v56 = vld [vmem:[#allocation5 + $0x330] sm:$0xff]  ;;  %v249_v57 = vld [vmem:[#allocation5 + $0x318] sm:$0xff] }
  0x69   :  { %990 = vmatpush1.bf16.msra.mxu0 %v1240_v1  ;;  %948 = vmatprep.subr.bf16.mxu1 %v1247_v7  ;;  %v197_v1 = vld [vmem:[#allocation5 + $0x178] sm:$0xff]  ;;  %v204_v7 = vld [vmem:[#allocation5 + $0x1b0] sm:$0xff] }
  0x6a   :  { %991 = vmatprep.subr.bf16.mxu0 %v1249_v10  ;;  %v1173_v5 = vcombine.high %v193_v0, %v197_v1  ;;  %v1170_v10 = vcombine.low %v192_v62, %v196_v63  ;;  %v1179_v12 = vcombine.high %v200_v6, %v204_v7  ;;  %v256_v63 = vld [vmem:[#allocation5 + $0x350] sm:$0xff] }
  0x6c   :  { %949 = vmatpush1.bf16.msra.mxu1 %v1246_v11  ;;  %v1172_v11 = vcombine.low %v193_v0, %v197_v1  ;;  %v260_v0 = vld [vmem:[#allocation5 + $0x370] sm:$0xff]  ;;  %v257_v1 = vld [vmem:[#allocation5 + $0x358] sm:$0xff] }
  0x6d   :  { %992 = vmatpush1.bf16.msra.mxu0 %v1248_v9  ;;  %1004 = vmatprep.subr.bf16.mxu1 %v1131_v15  ;;  %v205_v9 = vld [vmem:[#allocation5 + $0x1b8] sm:$0xff]  ;;  %v212_v15 = vld [vmem:[#allocation5 + $0x1f0] sm:$0xff] }
  0x6e   :  { %1047 = vmatprep.subr.bf16.mxu0 %v1133_v19  ;;  %v1181_v13 = vcombine.high %v201_v8, %v205_v9  ;;  %v1180_v19 = vcombine.low %v201_v8, %v205_v9  ;;  %v268_v8 = vld [vmem:[#allocation5 + $0x3b0] sm:$0xff]  ;;  %v265_v9 = vld [vmem:[#allocation5 + $0x398] sm:$0xff] }
  0xaa   :  { %v57_v20 = vpop.permute.xlu0 %56 }
  0xae   :  { %v62_v23 = vpop.permute.xlu0 %61 }
 0x101   :  { %v137_v21 = vpop.f32.mrb[0].mxu0 }
 0x102   :  { %v139_v22 = vpop.f32.mrb[1].mxu0  ;;  %v138_v25 = vadd.f32 %v137_v21, %v57_v20 }
 0x103   :  { %v140_v28 = vadd.f32 %v139_v22, %v57_v20  ;;  %v1187_v20 = vcombine.high %v208_v14, %v212_v15  ;;  %v216_v22 = vld [vmem:[#allocation5 + $0x210] sm:$0xff] }
 0x105   :  { %v143_v24 = vpop.f32.mrb[2].mxu0 }
 0x106   :  { %v144_v26 = vadd.f32 %v143_v24, %v62_v23  ;;  %v145_v27 = vpop.f32.mrb[3].mxu0  ;;  %v217_v24 = vld [vmem:[#allocation5 + $0x218] sm:$0xff] }
 0x107   :  { %v146_v29 = vadd.f32 %v145_v27, %v62_v23  ;;  %v220_v23 = vld [vmem:[#allocation5 + $0x230] sm:$0xff] }
 0x108   :  { %v1416_v31 = vpack.c.bf16 %v144_v26, %v138_v25  ;;  %v221_v25 = vld [vmem:[#allocation5 + $0x238] sm:$0xff]  ;;  %v1186_v26 = vcombine.low %v208_v14, %v212_v15  ;;  %v272_v15 = vld [vmem:[#allocation5 + $0x3d0] sm:$0xff] }
 0x109   :  { %v149_v35 = vpack.c.bf16 %v146_v29, %v140_v28  ;;  %v1195_v28 = vcombine.high %v216_v22, %v220_v23  ;;  %v1197_v29 = vcombine.high %v217_v24, %v221_v25  ;;  %v1196_v36 = vcombine.low %v217_v24, %v221_v25 }
 0x10b   :  { %950 = vmatprep.mubr.bf16.mxu1 %v149_v35  ;;  %993 = vmatprep.mubr.bf16.mxu0 %v149_v35 }
 0x10c   :  { %951 = vmatmul.mubr.bf16.vlgmr.msra.gmra.mrb[0].mxu1 %v1416_v31  ;;  %994 = vmatmul.mubr.bf16.vlgmr.msra.gmra.mrb[4].mxu0 %v1416_v31 }
 0x10d   :  { %1005 = vmatpush1.bf16.msra.mxu1 %v1130_v17  ;;  %1048 = vmatpush1.bf16.msra.mxu0 %v1132_v18  ;;  %v213_v17 = vld [vmem:[#allocation5 + $0x1f8] sm:$0xff]  ;;  %v1178_v18 = vcombine.low %v200_v6, %v204_v7  ;;  %v264_v7 = vld [vmem:[#allocation5 + $0x390] sm:$0xff] }
 0x10e   :  { %1036 = vmatprep.mubr.bf16.mxu1 %v149_v35  ;;  %1079 = vmatprep.mubr.bf16.mxu0 %v149_v35  ;;  %v1189_v21 = vcombine.high %v209_v16, %v213_v17  ;;  %v1188_v27 = vcombine.low %v209_v16, %v213_v17  ;;  %v1194_v35 = vcombine.low %v216_v22, %v220_v23  ;;  %v276_v16 = vld [vmem:[#allocation5 + $0x3f0] sm:$0xff]  ;;  %v273_v17 = vld [vmem:[#allocation5 + $0x3d8] sm:$0xff] }
 0x10f   :  { %1006 = vmatprep.subr.bf16.mxu1 %v1139_v37  ;;  %1049 = vmatprep.subr.bf16.mxu0 %v1141_v38  ;;  %v1203_v37 = vcombine.high %v224_v30, %v228_v32  ;;  %v1205_v38 = vcombine.high %v225_v33, %v229_v34  ;;  %v1250_v23 = vcombine.low %v272_v15, %v276_v16 }
 0x111   :  { %1007 = vmatpush1.bf16.msra.mxu1 %v1138_v42  ;;  %1050 = vmatpush1.bf16.msra.mxu0 %v1140_v43  ;;  %v237_v42 = vld [vmem:[#allocation5 + $0x2b8] sm:$0xff]  ;;  %v1202_v43 = vcombine.low %v224_v30, %v228_v32 }
 0x112   :  { %1008 = vmatprep.subr.bf16.mxu1 %v1147_v44  ;;  %1051 = vmatprep.subr.bf16.mxu0 %v1149_v45  ;;  %v1204_v44 = vcombine.low %v225_v33, %v229_v34  ;;  %v1211_v45 = vcombine.high %v232_v39, %v236_v40  ;;  %v1213_v46 = vcombine.high %v233_v41, %v237_v42 }
 0x115   :  { %1009 = vmatpush1.bf16.msra.mxu1 %v1146_v50  ;;  %1052 = vmatpush1.bf16.msra.mxu0 %v1148_v51  ;;  %v245_v50 = vld [vmem:[#allocation5 + $0x2f8] sm:$0xff]  ;;  %v1210_v51 = vcombine.low %v232_v39, %v236_v40 }
 0x116   :  { %1010 = vmatprep.subr.bf16.mxu1 %v1155_v52  ;;  %1053 = vmatprep.subr.bf16.mxu0 %v1157_v53  ;;  %v1212_v52 = vcombine.low %v233_v41, %v237_v42  ;;  %v1219_v53 = vcombine.high %v240_v47, %v244_v48  ;;  %v1221_v54 = vcombine.high %v241_v49, %v245_v50 }
 0x119   :  { %1011 = vmatpush1.bf16.msra.mxu1 %v1154_v58  ;;  %1054 = vmatpush1.bf16.msra.mxu0 %v1156_v59  ;;  %v253_v58 = vld [vmem:[#allocation5 + $0x338] sm:$0xff]  ;;  %v1218_v59 = vcombine.low %v240_v47, %v244_v48 }
 0x11a   :  { %1012 = vmatprep.subr.bf16.mxu1 %v1163_v60  ;;  %1055 = vmatprep.subr.bf16.mxu0 %v1165_v61  ;;  %v1220_v60 = vcombine.low %v241_v49, %v245_v50  ;;  %v1227_v61 = vcombine.high %v248_v55, %v252_v56  ;;  %v1229_v62 = vcombine.high %v249_v57, %v253_v58 }
 0x11d   :  { %1013 = vmatpush1.bf16.msra.mxu1 %v1162_v2  ;;  %1056 = vmatpush1.bf16.msra.mxu0 %v1164_v3  ;;  %v261_v2 = vld [vmem:[#allocation5 + $0x378] sm:$0xff]  ;;  %v1226_v3 = vcombine.low %v248_v55, %v252_v56 }
 0x11e   :  { %1014 = vmatprep.subr.bf16.mxu1 %v1171_v4  ;;  %1057 = vmatprep.subr.bf16.mxu0 %v1173_v5  ;;  %v1228_v4 = vcombine.low %v249_v57, %v253_v58  ;;  %v1235_v5 = vcombine.high %v256_v63, %v260_v0  ;;  %v1237_v6 = vcombine.high %v257_v1, %v261_v2 }
 0x121   :  { %1015 = vmatpush1.bf16.msra.mxu1 %v1170_v10  ;;  %1058 = vmatpush1.bf16.msra.mxu0 %v1172_v11  ;;  %v269_v10 = vld [vmem:[#allocation5 + $0x3b8] sm:$0xff]  ;;  %v1234_v11 = vcombine.low %v256_v63, %v260_v0 }
 0x122   :  { %1016 = vmatprep.subr.bf16.mxu1 %v1179_v12  ;;  %1059 = vmatprep.subr.bf16.mxu0 %v1181_v13  ;;  %v1236_v12 = vcombine.low %v257_v1, %v261_v2  ;;  %v1243_v13 = vcombine.high %v264_v7, %v268_v8  ;;  %v1245_v14 = vcombine.high %v265_v9, %v269_v10 }
 0x125   :  { %1017 = vmatpush1.bf16.msra.mxu1 %v1178_v18  ;;  %1060 = vmatpush1.bf16.msra.mxu0 %v1180_v19  ;;  %v277_v18 = vld [vmem:[#allocation5 + $0x3f8] sm:$0xff]  ;;  %v1242_v19 = vcombine.low %v264_v7, %v268_v8 }
 0x126   :  { %1018 = vmatprep.subr.bf16.mxu1 %v1187_v20  ;;  %1061 = vmatprep.subr.bf16.mxu0 %v1189_v21  ;;  %v1244_v20 = vcombine.low %v265_v9, %v269_v10  ;;  %v1251_v21 = vcombine.high %v272_v15, %v276_v16  ;;  %v1253_v22 = vcombine.high %v273_v17, %v277_v18 }
 0x127   :  { %v1252_v24 = vcombine.low %v273_v17, %v277_v18 }
 0x129   :  { %1019 = vmatpush1.bf16.msra.mxu1 %v1186_v26  ;;  %1062 = vmatpush1.bf16.msra.mxu0 %v1188_v27 }
 0x12a   :  { %1020 = vmatprep.subr.bf16.mxu1 %v1195_v28  ;;  %1063 = vmatprep.subr.bf16.mxu0 %v1197_v29 }
 0x12d   :  { %1021 = vmatpush1.bf16.msra.mxu1 %v1194_v35  ;;  %1064 = vmatpush1.bf16.msra.mxu0 %v1196_v36 }
 0x12e   :  { %1022 = vmatprep.subr.bf16.mxu1 %v1203_v37  ;;  %1065 = vmatprep.subr.bf16.mxu0 %v1205_v38 }
 0x131   :  { %1023 = vmatpush1.bf16.msra.mxu1 %v1202_v43  ;;  %1066 = vmatpush1.bf16.msra.mxu0 %v1204_v44 }
 0x132   :  { %1024 = vmatprep.subr.bf16.mxu1 %v1211_v45  ;;  %1067 = vmatprep.subr.bf16.mxu0 %v1213_v46 }
 0x135   :  { %1025 = vmatpush1.bf16.msra.mxu1 %v1210_v51  ;;  %1068 = vmatpush1.bf16.msra.mxu0 %v1212_v52 }
 0x136   :  { %1026 = vmatprep.subr.bf16.mxu1 %v1219_v53  ;;  %1069 = vmatprep.subr.bf16.mxu0 %v1221_v54 }
 0x139   :  { %1027 = vmatpush1.bf16.msra.mxu1 %v1218_v59  ;;  %1070 = vmatpush1.bf16.msra.mxu0 %v1220_v60 }
 0x13a   :  { %1028 = vmatprep.subr.bf16.mxu1 %v1227_v61  ;;  %1071 = vmatprep.subr.bf16.mxu0 %v1229_v62 }
 0x13d   :  { %1029 = vmatpush1.bf16.msra.mxu1 %v1226_v3  ;;  %1072 = vmatpush1.bf16.msra.mxu0 %v1228_v4 }
 0x13e   :  { %1030 = vmatprep.subr.bf16.mxu1 %v1235_v5  ;;  %1073 = vmatprep.subr.bf16.mxu0 %v1237_v6 }
 0x141   :  { %1031 = vmatpush1.bf16.msra.mxu1 %v1234_v11  ;;  %1074 = vmatpush1.bf16.msra.mxu0 %v1236_v12 }
 0x142   :  { %1032 = vmatprep.subr.bf16.mxu1 %v1243_v13  ;;  %1075 = vmatprep.subr.bf16.mxu0 %v1245_v14 }
 0x145   :  { %1033 = vmatpush1.bf16.msra.mxu1 %v1242_v19  ;;  %1076 = vmatpush1.bf16.msra.mxu0 %v1244_v20 }
 0x146   :  { %1034 = vmatprep.subr.bf16.mxu1 %v1251_v21  ;;  %1077 = vmatprep.subr.bf16.mxu0 %v1253_v22 }
 0x149   :  { %1035 = vmatpush1.bf16.msra.mxu1 %v1250_v23  ;;  %1078 = vmatpush1.bf16.msra.mxu0 %v1252_v24 }
 0x14c   :  { %1037 = vmatmul.mubr.bf16.vlgmr.msra.gmra.mrb[4].mxu1 %v1416_v31  ;;  %1080 = vmatmul.mubr.bf16.vlgmr.msra.gmra.mrb[8].mxu0 %v1416_v31 }
 0x1df   :  { %v952_v25 = vpop.f32.mrb[0].mxu1  ;;  %v995_v26 = vpop.f32.mrb[4].mxu0 }
 0x1e0   :  { %1090 = vst [vmem:[#allocation7] sm:$0xff] %v952_v25  ;;  %1092 = vst [vmem:[#allocation7 + $0x10] sm:$0xff] %v995_v26  ;;  %v954_v27 = vpop.f32.mrb[1].mxu1  ;;  %v997_v28 = vpop.f32.mrb[5].mxu0 }
 0x1e1   :  { %1091 = vst [vmem:[#allocation7 + $0x8] sm:$0xff] %v954_v27  ;;  %1093 = vst [vmem:[#allocation7 + $0x18] sm:$0xff] %v997_v28  ;;  %v956_v29 = vpop.f32.mrb[2].mxu1  ;;  %v999_v30 = vpop.f32.mrb[6].mxu0 }
 0x1e2   :  { %1098 = vst [vmem:[#allocation7 + $0x40] sm:$0x3] %v956_v29  ;;  %1100 = vst [vmem:[#allocation7 + $0x50] sm:$0x3] %v999_v30  ;;  %v958_v32 = vpop.f32.mrb[3].mxu1  ;;  %v1001_v33 = vpop.f32.mrb[7].mxu0 }
 0x1e3   :  { %1099 = vst [vmem:[#allocation7 + $0x48] sm:$0x3] %v958_v32  ;;  %1101 = vst [vmem:[#allocation7 + $0x58] sm:$0x3] %v1001_v33 }
 0x21f   :  { %v1038_v34 = vpop.f32.mrb[4].mxu1  ;;  %v1081_v31 = vpop.f32.mrb[8].mxu0 }
 0x220   :  { %1094 = vst [vmem:[#allocation7 + $0x20] sm:$0xff] %v1038_v34  ;;  %1096 = vst [vmem:[#allocation7 + $0x30] sm:$0xff] %v1081_v31  ;;  %v1040_v35 = vpop.f32.mrb[5].mxu1  ;;  %v1083_v36 = vpop.f32.mrb[9].mxu0 }
 0x221   :  { %1095 = vst [vmem:[#allocation7 + $0x28] sm:$0xff] %v1040_v35  ;;  %1097 = vst [vmem:[#allocation7 + $0x38] sm:$0xff] %v1083_v36  ;;  %v1042_v37 = vpop.f32.mrb[6].mxu1  ;;  %v1085_v38 = vpop.f32.mrb[10].mxu0 }
 0x222   :  { %1102 = vst [vmem:[#allocation7 + $0x60] sm:$0x3] %v1042_v37  ;;  %1104 = vst [vmem:[#allocation7 + $0x70] sm:$0x3] %v1085_v38  ;;  %v1044_v39 = vpop.f32.mrb[7].mxu1  ;;  %v1087_v40 = vpop.f32.mrb[11].mxu0 }
 0x223   :  { %1103 = vst [vmem:[#allocation7 + $0x68] sm:$0x3] %v1044_v39  ;;  %1105 = vst [vmem:[#allocation7 + $0x78] sm:$0x3] %v1087_v40 }
 0x224   :  { %1325 = shalt.err (!%p1322_p6)
}
 0x225   :  { %s1326_s26 = scalar_lea.hbm %s1438_s4, 2048 }
 0x226   :  { %p1327_p7 = scmp.ne.s32.totalorder %s1438_s4, %s1326_s26  ;;  %p1330_p8 = scmp.lt.u32.totalorder %s1326_s26, %s1438_s4 }
 0x228   :  { %p1332_p9 = pnand %p1330_p8, %p1327_p7 }
 0x22a   :  { %1335 = shalt.err (!%p1332_p9)
}
 0x22b   :  { %s1351_s5 = smov 1024   ;;  %s1352_s6 = smov 64  }
 0x22c   :  { %1117 = dma.vmem_to_hbm [thread:$0]  %s1112_s22, 2048, %s1438_s4, [#allocation4], %s1351_s5, %s1351_s5, %s1352_s6  }
 0x22d   :  { %1340 = dma.done.wait [#allocation4], 2048  }
 0x22e   :  { %1341 = vsyncadd [#allocation4], 4294965248 }
 0x22f   :  { %1121 = vsyncpa [#allocation3], 1 }
 0x230   :  { %1122 = vsyncpa [#allocation6], 1 }
 0x231   :  { %1123 = vsyncpa [#allocation4], 1 }

</bundles_post_ra>
